<compile_context>
chip_gen: v7x
topology: tpu7x:2x2x1
jax: 0.10.0
libtpu: 0.0.40
codegen_flags: <defaults>
</compile_context>

<pallas_src>
import jax
import jax.numpy as jnp
import numpy as np
from jax.experimental import pallas as pl
from jax.experimental.pallas import tpu as pltpu


def controller_kernel(z_ref, h_ref, wz_ref, wh_ref, b_ref, o_ref):
    # Fused concat+Linear as two accumulating MXU dots (no lane concat / VMEM
    # temp).  f32 accumulation; bias added in the f32 epilogue before the cast.
    acc = jnp.dot(z_ref[...], wz_ref[...], preferred_element_type=jnp.float32)
    acc = acc + jnp.dot(h_ref[...], wh_ref[...],
                        preferred_element_type=jnp.float32)
    o_ref[...] = (acc + b_ref[...]).astype(o_ref.dtype)


def prep_controller_params(weight, bias, latent, param_dtype=None):
    """One-time parameter prep (outside the per-call path).

    torch-style weight (action, latent+recurrent) is split and transposed into
      w_z: (latent, action), w_h: (recurrent, action), b2d: (1, action) f32
    so that y = cat([z, h], 1) @ W^T + b == z @ w_z + h @ w_h + b (unchanged).
    Optionally cast the weights to bf16 for HBM savings; accumulation is f32.
    """
    w = jnp.asarray(weight)
    w_z = w[:, :latent].T
    w_h = w[:, latent:].T
    if param_dtype is not None:
        w_z = w_z.astype(param_dtype)
        w_h = w_h.astype(param_dtype)
    b2d = jnp.asarray(bias).reshape(1, -1).astype(jnp.float32)
    return w_z, w_h, b2d


def _row_tile(n, block_n):
    # Whole-batch single tile for small n; otherwise big, sublane-aligned row
    # tiles with >= 2 grid steps so the "parallel" axis uses both v7x TCs.
    if n <= min(block_n, 1024):
        return n
    tn = min(block_n, -(-n // 2))      # ceil(n/2) -> at least 2 tiles
    return max(8, (tn // 8) * 8)       # multiple of 8 block rows


def controller_forward(z, h, w_z, w_h, b2d, *, block_n=2048):
    """z: (N, latent), h: (N, recurrent), w_z: (latent, action),
    w_h: (recurrent, action), b2d: (1, action) f32.
    Returns (N, action) == Linear(cat([z, h], dim=1))."""
    n, latent = z.shape
    _, recurrent = h.shape
    lw, action = w_z.shape
    assert lw == latent and w_h.shape == (recurrent, action)

    tn = _row_tile(n, block_n)
    grid = (pl.cdiv(n, tn),)

    # Advisory cost estimate: this op is purely HBM-bandwidth bound.
    in_bytes = n * (latent * z.dtype.itemsize + recurrent * h.dtype.itemsize)
    param_bytes = ((latent + recurrent) * action * w_z.dtype.itemsize
                   + action * 4)
    out_bytes = n * action * z.dtype.itemsize
    cost = pl.CostEstimate(
        flops=2 * n * (latent + recurrent) * action,
        transcendentals=0,
        bytes_accessed=in_bytes + param_bytes + out_bytes)

    # Lane-padded (to 128) double-buffered footprint of the z/h/out row tiles
    # plus slack for the f32 epilogue temp and the resident params.  Setting
    # the scoped limit explicitly keeps large tiles working on v5e (16 MiB
    # default) while staying within v7x's 64 MiB physical VMEM.
    itemsize = max(z.dtype.itemsize, h.dtype.itemsize)
    per_tile = tn * 128 * itemsize
    vmem_need = 2 * 3 * per_tile + tn * 128 * 4 + (2 << 20)
    vmem_limit = int(min(max(vmem_need, 32 << 20), 64 << 20))

    return pl.pallas_call(
        controller_kernel,
        out_shape=jax.ShapeDtypeStruct((n, action), z.dtype),
        grid=grid,
        in_specs=[
            pl.BlockSpec((tn, latent), lambda i: (i, 0)),
            pl.BlockSpec((tn, recurrent), lambda i: (i, 0)),
            # Parameters are a few KB: whole-array VMEM-resident across every
            # grid step (constant block index -> no re-DMA per tile).
            pl.BlockSpec((latent, action), lambda i: (0, 0)),
            pl.BlockSpec((recurrent, action), lambda i: (0, 0)),
            pl.BlockSpec((1, action), lambda i: (0, 0)),
        ],
        out_specs=pl.BlockSpec((tn, action), lambda i: (i, 0)),
        compiler_params=pltpu.CompilerParams(
            dimension_semantics=("parallel",),
            vmem_limit_bytes=vmem_limit),
        cost_estimate=cost,
    )(z, h, w_z, w_h, b2d)


# jit the hot path; parameter prep stays outside it.
controller_apply = jax.jit(controller_forward, static_argnames=("block_n",))


if __name__ == "__main__":
    # Small shapes consistent with the module: Controller(latent, recurrent, action)
    batch, latent, recurrent, action = 2, 32, 16, 8

    key = jax.random.PRNGKey(0)
    kz, kh, kw, kb = jax.random.split(key, 4)

    z = jax.random.normal(kz, (batch, latent), dtype=jnp.float32)
    h = jax.random.normal(kh, (batch, recurrent), dtype=jnp.float32)

    # Deterministic parameter init (torch.nn.Linear-like uniform bound).
    fan_in = latent + recurrent
    bound = 1.0 / np.sqrt(fan_in)
    weight = jax.random.uniform(kw, (action, fan_in), minval=-bound,
                                maxval=bound, dtype=jnp.float32)
    bias = jax.random.uniform(kb, (action,), minval=-bound, maxval=bound,
                              dtype=jnp.float32)

    # One-time parameter packing / split (outside the per-call path).
    w_z, w_h, b2d = prep_controller_params(weight, bias, latent)

    # 1) Small-batch path: single whole-batch tile.
    out = jax.block_until_ready(controller_apply(z, h, w_z, w_h, b2d))
    ref = jnp.concatenate([z, h], axis=1) @ weight.T + bias
    np.testing.assert_allclose(np.asarray(out), np.asarray(ref),
                               rtol=1e-5, atol=1e-5)

    # 2) Gridded path: n=4096 -> two 2048-row tiles, parallel across cores,
    #    parameters stay resident.
    big_n = 4096
    kz2, kh2 = jax.random.split(jax.random.PRNGKey(1), 2)
    z2 = jax.random.normal(kz2, (big_n, latent), dtype=jnp.float32)
    h2 = jax.random.normal(kh2, (big_n, recurrent), dtype=jnp.float32)
    out2 = jax.block_until_ready(controller_apply(z2, h2, w_z, w_h, b2d))
    ref2 = jnp.concatenate([z2, h2], axis=1) @ weight.T + bias
    np.testing.assert_allclose(np.asarray(out2), np.asarray(ref2),
                               rtol=1e-5, atol=1e-5)

    # 3) bf16 streaming path (halves dominant HBM bytes); f32 accumulation in
    #    kernel, loosened tolerances per the dtype change.
    w_z16, w_h16, b2d16 = prep_controller_params(weight, bias, latent,
                                                 param_dtype=jnp.bfloat16)
    z16 = z2.astype(jnp.bfloat16)
    h16 = h2.astype(jnp.bfloat16)
    out3 = jax.block_until_ready(controller_apply(z16, h16, w_z16, w_h16, b2d16))
    np.testing.assert_allclose(np.asarray(out3, dtype=np.float32),
                               np.asarray(ref2), rtol=2e-2, atol=3e-2)

    print("KERNEL_OK")
</pallas_src>

<mosaic_0001>
module attributes {stable_mosaic.version = 11 : i64} {
  func.func @controller_kernel(%arg0: i32, %arg1: memref<2x32xf32, #tpu.memory_space<vmem>>, %arg2: memref<2x16xf32, #tpu.memory_space<vmem>>, %arg3: memref<32x8xf32, #tpu.memory_space<vmem>>, %arg4: memref<16x8xf32, #tpu.memory_space<vmem>>, %arg5: memref<1x8xf32, #tpu.memory_space<vmem>>, %arg6: memref<2x8xf32, #tpu.memory_space<vmem>>) attributes {dimension_semantics = [#tpu.dimension_semantics<parallel>], iteration_bounds = array<i64: 1>, scalar_prefetch = 0 : i64, scratch_operands = 0 : i64, tpu.core_type = #tpu.core_type<tc>, window_params = [{transform_indices = @transform_0, window_bounds = array<i64: 2, 32>}, {transform_indices = @transform_1, window_bounds = array<i64: 2, 16>}, {pipeline_mode = #tpu.pipeline_mode<synchronous>, transform_indices = @transform_2, window_bounds = array<i64: 32, 8>}, {pipeline_mode = #tpu.pipeline_mode<synchronous>, transform_indices = @transform_3, window_bounds = array<i64: 16, 8>}, {pipeline_mode = #tpu.pipeline_mode<synchronous>, transform_indices = @transform_4, window_bounds = array<i64: 1, 8>}, {transform_indices = @transform_5, window_bounds = array<i64: 2, 8>}]} {
    %c0 = arith.constant 0 : index
    %c0_0 = arith.constant 0 : index
    %0 = vector.load %arg1[%c0, %c0_0] : memref<2x32xf32, #tpu.memory_space<vmem>>, vector<2x32xf32>
    %c0_1 = arith.constant 0 : index
    %c0_2 = arith.constant 0 : index
    %1 = vector.load %arg3[%c0_1, %c0_2] : memref<32x8xf32, #tpu.memory_space<vmem>>, vector<32x8xf32>
    %cst = arith.constant dense<0.000000e+00> : vector<2x8xf32>
    %2 = tpu.matmul %0, %1, %cst {dimension_numbers = #tpu.dot_dimension_numbers<[1], [0], [0], [1], [0, 0, 1, 1], [], []>} : vector<2x32xf32>, vector<32x8xf32>, vector<2x8xf32> -> vector<2x8xf32>
    %c0_3 = arith.constant 0 : index
    %c0_4 = arith.constant 0 : index
    %3 = vector.load %arg2[%c0_3, %c0_4] : memref<2x16xf32, #tpu.memory_space<vmem>>, vector<2x16xf32>
    %c0_5 = arith.constant 0 : index
    %c0_6 = arith.constant 0 : index
    %4 = vector.load %arg4[%c0_5, %c0_6] : memref<16x8xf32, #tpu.memory_space<vmem>>, vector<16x8xf32>
    %cst_7 = arith.constant dense<0.000000e+00> : vector<2x8xf32>
    %5 = tpu.matmul %3, %4, %cst_7 {dimension_numbers = #tpu.dot_dimension_numbers<[1], [0], [0], [1], [0, 0, 1, 1], [], []>} : vector<2x16xf32>, vector<16x8xf32>, vector<2x8xf32> -> vector<2x8xf32>
    %6 = arith.addf %2, %5 : vector<2x8xf32>
    %c0_8 = arith.constant 0 : index
    %c0_9 = arith.constant 0 : index
    %7 = vector.load %arg5[%c0_8, %c0_9] : memref<1x8xf32, #tpu.memory_space<vmem>>, vector<1x8xf32>
    %8 = vector.broadcast %7 : vector<1x8xf32> to vector<2x8xf32>
    %9 = arith.addf %6, %8 : vector<2x8xf32>
    %c0_10 = arith.constant 0 : index
    %c0_11 = arith.constant 0 : index
    %10 = vector.load %arg6[%c0_10, %c0_11] : memref<2x8xf32, #tpu.memory_space<vmem>>, vector<2x8xf32>
    tpu.vector_store %arg6[%c0_10, %c0_11], %9 {strides = array<i32>} : memref<2x8xf32, #tpu.memory_space<vmem>>, vector<2x8xf32>,
    return
  }
  func.func @transform_0(%arg0: i32) -> (i32, i32) {
    %c0_i32 = arith.constant 0 : i32
    %c0_i32_0 = arith.constant 0 : i32
    return %arg0, %c0_i32 : i32, i32
  }
  func.func @transform_1(%arg0: i32) -> (i32, i32) {
    %c0_i32 = arith.constant 0 : i32
    %c0_i32_0 = arith.constant 0 : i32
    return %arg0, %c0_i32 : i32, i32
  }
  func.func @transform_2(%arg0: i32) -> (i32, i32) {
    %c0_i32 = arith.constant 0 : i32
    %c0_i32_0 = arith.constant 0 : i32
    %c0_i32_1 = arith.constant 0 : i32
    return %c0_i32, %c0_i32_0 : i32, i32
  }
  func.func @transform_3(%arg0: i32) -> (i32, i32) {
    %c0_i32 = arith.constant 0 : i32
    %c0_i32_0 = arith.constant 0 : i32
    %c0_i32_1 = arith.constant 0 : i32
    return %c0_i32, %c0_i32_0 : i32, i32
  }
  func.func @transform_4(%arg0: i32) -> (i32, i32) {
    %c0_i32 = arith.constant 0 : i32
    %c0_i32_0 = arith.constant 0 : i32
    %c0_i32_1 = arith.constant 0 : i32
    return %c0_i32, %c0_i32_0 : i32, i32
  }
  func.func @transform_5(%arg0: i32) -> (i32, i32) {
    %c0_i32 = arith.constant 0 : i32
    %c0_i32_0 = arith.constant 0 : i32
    return %arg0, %c0_i32 : i32, i32
  }
}

</mosaic_0001>

<bundles_post_ra>
// kernel: controller_forward.1
= control target key start
LH: loop header
LB: loop body
LE: loop exit
PB: predicated region body
PF: predicated region fallthrough
CT: control target
= control target key end

     0   :  { %v267_v3 = vmov 0.0|0.0   ;;  %vm268_vm0 = vmmov 0   ;;  %v269_v9 = vmov 0.0   ;;  %s340_s0 = inlined_call_operand.vmem [shape: f32[2,32], index: 0, kind: input, shape index: {}]   ;;  %s341_s1 = inlined_call_operand.vmem [shape: f32[2,16], index: 1, kind: input, shape index: {}]   ;;  %s342_s2 = inlined_call_operand.vmem [shape: f32[32,8], index: 2, kind: input, shape index: {}]   ;;  %s343_s3 = inlined_call_operand.vmem [shape: f32[16,8], index: 3, kind: input, shape index: {}]   ;;  %s344_s4 = inlined_call_operand.vmem [shape: f32[1,8], index: 4, kind: input, shape index: {}]   ;;  %s345_s5 = inlined_call_operand.hbm [shape: f32[2,8], index: 5, kind: output, shape index: {}]  }
   0x1   :  { %v22_v0 = vld [vmem:[%s342_s2] sm:$0xff]  ;;  %v23_v1 = vld [vmem:[%s342_s2 + $0x8] sm:$0xff]  ;;  %233 = vmatprep.subr.bf16.mxu1 %v267_v3  ;;  %230 = vmatprep.subr.bf16.mxu0 %v267_v3  ;;  %v24_v6 = vld [vmem:[%s342_s2 + $0x10] sm:$0xff] }
   0x2   :  { %v27_v2 = vld [vmem:[%s343_s3] sm:$0xff]  ;;  %v234_v4 = vpack.c.bf16 %v23_v1, %v22_v0  ;;  %v28_v5 = vld [vmem:[%s343_s3 + $0x8] sm:$0xff]  ;;  %v25_v7 = vld [vmem:[%s342_s2 + $0x18] sm:$0xff]  ;;  %216 = vmatprep.mubr.msk.f32.mxu0 %vm268_vm0, %v269_v9  ;;  %227 = vmatprep.mubr.msk.f32.mxu1 %vm268_vm0, %v269_v9 }
   0x3   :  { %v231_v8 = vpack.c.bf16 %v28_v5, %v27_v2 }
   0x4   :  { %10 = vsyncpa [#allocation3], 0  ;;  %235 = vmatpush3.bf16.msra.mxu1 %v234_v4  ;;  %v237_v10 = vpack.c.bf16 %v25_v7, %v24_v6  ;;  %v26_v11 = vld [vmem:[%s341_s1] sm:$0x3]  ;;  %vm29_vm1 = vcmask 130048   ;;  %vm103_vm2 = vcmask 261120  }
   0x5   :  { %232 = vmatpush3.bf16.msra.mxu0 %v231_v8  ;;  %236 = vmatprep.subr.bf16.mxu1 %v267_v3  ;;  %v21_v12 = vld [vmem:[%s340_s0] sm:$0x3]  ;;  %s270_s9 = smov [#allocation2]   ;;  %vm185_vm3 = vcmask 58368  }
   0x6   :  { %v203_v16 = vld [vmem:[%s344_s4] ss:$0 sm:$0xff]  ;;  %s193_s10 = sshll.u32 %s270_s9, 4  ;;  %s194_s10 = int_to_ptr.vmem [resolvable:$true] %s193_s10 }
   0x7   :  { %s243_s1 = scalar_lea.vmem %s194_s10, 32  ;;  %p248_p1 = scmp.lt.s32.totalorder %s194_s10, %s194_s10 }
   0x8   :  { %238 = vmatpush3.bf16.msra.mxu1 %v237_v10  ;;  %217 = vmatmul.mubr.msk.f32.vlgmr.msra.gmra.mrb[0].mxu0 %vm29_vm1, %v26_v11  ;;  %p244_p0 = scmp.ne.s32.totalorder %s194_s10, %s243_s1  ;;  %p249_p2 = scmp.lt.s32.totalorder %s243_s1, %s243_s1 }
   0xa   :  { %p250_p3 = por %p249_p2, %p248_p1 }
   0xb   :  { %228 = vmatmul.mubr.msk.f32.vlgmr.msra.gmra.mrb[0].mxu1 %vm103_vm2, %v21_v12 }
   0xc   :  { %p251_p4 = pnand %p250_p3, %p244_p0 }
  0xdb   :  { %v99_v13 = vpop.f32.mrb[0].mxu0 }
  0xdc   :  { %v218_v14 = vpop.f32.mrb[1].mxu0 }
  0xde   :  { %v173_v15 = vpop.f32.mrb[0].mxu1 }
  0xdf   :  { %v174_v17 = vadd.f32 %v173_v15, %v99_v13  ;;  %v229_v18 = vpop.f32.mrb[1].mxu1 }
  0xe1   :  { %v184_v19 = vadd.f32 %v203_v16, %v174_v17 }
  0xe3   :  { %186 = vst.msk [vmem:[#allocation2] sm:$0x3] %vm185_vm3, %v184_v19 }
  0xe4   :  { %254 = shalt.err (!%p251_p4)
}
  0xe5   :  { %s255_s12 = scalar_lea.hbm %s345_s5, 32 }
  0xe6   :  { %p256_p5 = scmp.ne.s32.totalorder %s345_s5, %s255_s12  ;;  %p259_p6 = scmp.lt.u32.totalorder %s255_s12, %s345_s5 }
  0xe8   :  { %p261_p7 = pnand %p259_p6, %p256_p5 }
  0xea   :  { %264 = shalt.err (!%p261_p7)
}
  0xeb   :  { %196 = dma.vmem_to_hbm [thread:$0]  %s194_s10, 32, %s345_s5, [#allocation3]  }
  0xec   :  { %265 = dma.done.wait [#allocation3], 32  }
  0xed   :  { %266 = vsyncadd [#allocation3], 4294967264 }
  0xee   :  { %200 = vsyncpa [#allocation3], 1 }

</bundles_post_ra>
